<compile_context>
chip_gen: v5e
topology: v5e:2x2
jax: 0.10.0
libtpu: 0.0.40
codegen_flags: <defaults>
</compile_context>

<pallas_src>
import jax
import jax.numpy as jnp
from jax.experimental import pallas as pl
from jax.experimental.pallas import tpu as pltpu

# BaGTI constants module values (deterministic, set in-script).
COEFF_ENERGY = 0.5
COEFF_LATENCY = 0.5

N_NODES = 4
EMB = 5
GNN_FLAT = N_NODES * 2 * EMB            # 40  (BiGRU -> 2*emb per node)
D_FLAT = 4 * 5 * 10                     # 200
IN_FEATS = GNN_FLAT + D_FLAT            # 240
K_PAD = 256                             # layer-1 contraction padded to 2*128
H1, H2, H3, OUT = 32, 32, 16, 2
NEG_SLOPE = 0.01                        # nn.LeakyReLU() default slope


def _leaky_relu(x):
    return jnp.where(x >= 0, x, NEG_SLOPE * x)


def _find_kernel(x_ref, w1_ref, b1_ref, w2_ref, b2_ref, w3_ref, b3_ref,
                 w4_ref, b4_ref, out_ref):
    # x_ref: (TB, K_PAD) f32 | weights: bf16 (VMEM-resident) | biases: f32
    # out_ref: (TB, 1) f32
    h = jnp.dot(x_ref[...].astype(jnp.bfloat16), w1_ref[...],
                preferred_element_type=jnp.float32) + b1_ref[...]
    h = _leaky_relu(h)                                          # (TB, 32)
    h = jnp.dot(h.astype(jnp.bfloat16), w2_ref[...],
                preferred_element_type=jnp.float32) + b2_ref[...]
    h = _leaky_relu(h)                                          # (TB, 32)
    h = jnp.dot(h.astype(jnp.bfloat16), w3_ref[...],
                preferred_element_type=jnp.float32) + b3_ref[...]
    h = _leaky_relu(h)                                          # (TB, 16)
    z = jnp.dot(h.astype(jnp.bfloat16), w4_ref[...],
                preferred_element_type=jnp.float32) + b4_ref[...]
    y = jax.nn.sigmoid(z)                                       # (TB, 2)
    # Inference path: Coeff_Energy * y[:, 0] + Coeff_Latency * y[:, 1]
    out_ref[...] = COEFF_ENERGY * y[:, 0:1] + COEFF_LATENCY * y[:, 1:2]


def _round_up(x, m):
    return (x + m - 1) // m * m


def energy_latency_gnn_forward(x_gnn, d, kernel_params, *, tb=128):
    """x_gnn: (B, 4, 2*EMB) post-GNN node embeddings; d: (B, 4, 5, 10).

    Returns a (B,) vector: Coeff_Energy*y0 + Coeff_Latency*y1 per sample.
    """
    w1, b1, w2, b2, w3, b3, w4, b4 = kernel_params
    B = x_gnn.shape[0]

    x = jnp.concatenate(
        [x_gnn.reshape(B, GNN_FLAT).astype(jnp.float32),
         d.reshape(B, D_FLAT).astype(jnp.float32)], axis=-1)    # (B, 240)

    tb = max(8, min(tb, _round_up(B, 8)))
    b_pad = _round_up(B, tb)
    x = jnp.pad(x, ((0, b_pad - B), (0, K_PAD - IN_FEATS)))     # (B_pad, 256)

    grid = (b_pad // tb,)
    resident = lambda i: (0, 0)   # weights/biases: same block every grid step

    out = pl.pallas_call(
        _find_kernel,
        out_shape=jax.ShapeDtypeStruct((b_pad, 1), jnp.float32),
        grid=grid,
        in_specs=[
            pl.BlockSpec((tb, K_PAD), lambda i: (i, 0)),
            pl.BlockSpec((K_PAD, H1), resident),
            pl.BlockSpec((1, H1), resident),
            pl.BlockSpec((H1, H2), resident),
            pl.BlockSpec((1, H2), resident),
            pl.BlockSpec((H2, H3), resident),
            pl.BlockSpec((1, H3), resident),
            pl.BlockSpec((H3, OUT), resident),
            pl.BlockSpec((1, OUT), resident),
        ],
        out_specs=pl.BlockSpec((tb, 1), lambda i: (i, 0)),
        compiler_params=pltpu.CompilerParams(
            dimension_semantics=("parallel",)),
    )(x, w1, b1, w2, b2, w3, b3, w4, b4)

    return out[:B, 0]


def init_params(key):
    """Deterministic init mimicking PyTorch nn.Linear default U(-1/sqrt(fin), +)."""
    dims = [(IN_FEATS, H1), (H1, H2), (H2, H3), (H3, OUT)]
    params = []
    for fin, fout in dims:
        key, kw, kb = jax.random.split(key, 3)
        bound = 1.0 / float(fin) ** 0.5
        w = jax.random.uniform(kw, (fin, fout), jnp.float32, -bound, bound)
        b = jax.random.uniform(kb, (1, fout), jnp.float32, -bound, bound)
        params += [w, b]
    return params


def prep_kernel_params(params):
    """Pad layer-1 contraction dim to 256 and cast weights to bf16 (biases f32)."""
    w1, b1, w2, b2, w3, b3, w4, b4 = params
    w1p = jnp.pad(w1, ((0, K_PAD - IN_FEATS), (0, 0)))   # zero rows: no effect
    cast = lambda w: w.astype(jnp.bfloat16)
    return [cast(w1p), b1, cast(w2), b2, cast(w3), b3, cast(w4), b4]


def reference_forward(x_gnn, d, kernel_params):
    """Pure-JAX reference with identical bf16-in / f32-accumulate numerics."""
    w1, b1, w2, b2, w3, b3, w4, b4 = kernel_params
    B = x_gnn.shape[0]
    h = jnp.concatenate([x_gnn.reshape(B, GNN_FLAT),
                         d.reshape(B, D_FLAT)], axis=-1).astype(jnp.float32)
    h = jnp.pad(h, ((0, 0), (0, K_PAD - IN_FEATS)))
    dense = lambda a, w, b: jnp.dot(a.astype(jnp.bfloat16), w,
                                    preferred_element_type=jnp.float32) + b
    h = _leaky_relu(dense(h, w1, b1))
    h = _leaky_relu(dense(h, w2, b2))
    h = _leaky_relu(dense(h, w3, b3))
    y = jax.nn.sigmoid(dense(h, w4, b4))
    return COEFF_ENERGY * y[:, 0] + COEFF_LATENCY * y[:, 1]


if __name__ == "__main__":
    key = jax.random.PRNGKey(0)
    key, kx, kd = jax.random.split(key, 3)

    B = 16
    # Flattened post-GNN node embeddings (stand-in for the GatedRGCNLayer stack)
    # and the scheduling-decision tensor d (4 x 5 x 10), as the module implies.
    x_gnn = jax.random.uniform(kx, (B, N_NODES, 2 * EMB), jnp.float32)
    d = jax.random.uniform(kd, (B, 4, 5, 10), jnp.float32)

    params = init_params(key)
    kparams = prep_kernel_params(params)

    # tb=8 -> grid=(2,) to exercise the batched grid with VMEM-resident weights;
    # use tb=128 (v5e) / tb=256 (v6e/v7x) for production batch sizes.
    out = energy_latency_gnn_forward(x_gnn, d, kparams, tb=8)
    out = jax.block_until_ready(out)

    ref = jax.block_until_ready(reference_forward(x_gnn, d, kparams))
    assert out.shape == (B,), out.shape
    assert jnp.allclose(out, ref, atol=1e-4, rtol=1e-4), (out, ref)

    print("KERNEL_OK")
</pallas_src>

<mosaic_0001>
module attributes {stable_mosaic.version = 11 : i64} {
  func.func @_find_kernel(%arg0: i32, %arg1: memref<8x256xf32, #tpu.memory_space<vmem>>, %arg2: memref<256x32xbf16, #tpu.memory_space<vmem>>, %arg3: memref<1x32xf32, #tpu.memory_space<vmem>>, %arg4: memref<32x32xbf16, #tpu.memory_space<vmem>>, %arg5: memref<1x32xf32, #tpu.memory_space<vmem>>, %arg6: memref<32x16xbf16, #tpu.memory_space<vmem>>, %arg7: memref<1x16xf32, #tpu.memory_space<vmem>>, %arg8: memref<16x2xbf16, #tpu.memory_space<vmem>>, %arg9: memref<1x2xf32, #tpu.memory_space<vmem>>, %arg10: memref<8x1xf32, #tpu.memory_space<vmem>>) attributes {dimension_semantics = [#tpu.dimension_semantics<parallel>], iteration_bounds = array<i64: 2>, scalar_prefetch = 0 : i64, scratch_operands = 0 : i64, tpu.core_type = #tpu.core_type<tc>, window_params = [{transform_indices = @transform_0, window_bounds = array<i64: 8, 256>}, {pipeline_mode = #tpu.pipeline_mode<synchronous>, transform_indices = @transform_1, window_bounds = array<i64: 256, 32>}, {pipeline_mode = #tpu.pipeline_mode<synchronous>, transform_indices = @transform_2, window_bounds = array<i64: 1, 32>}, {pipeline_mode = #tpu.pipeline_mode<synchronous>, transform_indices = @transform_3, window_bounds = array<i64: 32, 32>}, {pipeline_mode = #tpu.pipeline_mode<synchronous>, transform_indices = @transform_4, window_bounds = array<i64: 1, 32>}, {pipeline_mode = #tpu.pipeline_mode<synchronous>, transform_indices = @transform_5, window_bounds = array<i64: 32, 16>}, {pipeline_mode = #tpu.pipeline_mode<synchronous>, transform_indices = @transform_6, window_bounds = array<i64: 1, 16>}, {pipeline_mode = #tpu.pipeline_mode<synchronous>, transform_indices = @transform_7, window_bounds = array<i64: 16, 2>}, {pipeline_mode = #tpu.pipeline_mode<synchronous>, transform_indices = @transform_8, window_bounds = array<i64: 1, 2>}, {transform_indices = @transform_9, window_bounds = array<i64: 8, 1>}]} {
    %c0 = arith.constant 0 : index
    %c0_0 = arith.constant 0 : index
    %0 = vector.load %arg1[%c0, %c0_0] : memref<8x256xf32, #tpu.memory_space<vmem>>, vector<8x256xf32>
    %1 = arith.truncf %0 : vector<8x256xf32> to vector<8x256xbf16>
    %c0_1 = arith.constant 0 : index
    %c0_2 = arith.constant 0 : index
    %2 = vector.load %arg2[%c0_1, %c0_2] : memref<256x32xbf16, #tpu.memory_space<vmem>>, vector<256x32xbf16>
    %cst = arith.constant dense<0.000000e+00> : vector<8x32xf32>
    %3 = tpu.matmul %1, %2, %cst {dimension_numbers = #tpu.dot_dimension_numbers<[1], [0], [0], [1], [0, 0, 1, 1], [], []>} : vector<8x256xbf16>, vector<256x32xbf16>, vector<8x32xf32> -> vector<8x32xf32>
    %c0_3 = arith.constant 0 : index
    %c0_4 = arith.constant 0 : index
    %4 = vector.load %arg3[%c0_3, %c0_4] : memref<1x32xf32, #tpu.memory_space<vmem>>, vector<1x32xf32>
    %5 = vector.broadcast %4 : vector<1x32xf32> to vector<8x32xf32>
    %6 = arith.addf %3, %5 : vector<8x32xf32>
    %cst_5 = arith.constant 0.000000e+00 : f32
    %7 = vector.broadcast %cst_5 : f32 to vector<8x32xf32>
    %8 = arith.cmpf oge, %6, %7 : vector<8x32xf32>
    %cst_6 = arith.constant 0.00999999977 : f32
    %9 = vector.broadcast %cst_6 : f32 to vector<8x32xf32>
    %10 = arith.mulf %9, %6 : vector<8x32xf32>
    %11 = arith.select %8, %6, %10 : vector<8x32xi1>, vector<8x32xf32>
    %12 = arith.truncf %11 : vector<8x32xf32> to vector<8x32xbf16>
    %c0_7 = arith.constant 0 : index
    %c0_8 = arith.constant 0 : index
    %13 = vector.load %arg4[%c0_7, %c0_8] : memref<32x32xbf16, #tpu.memory_space<vmem>>, vector<32x32xbf16>
    %cst_9 = arith.constant dense<0.000000e+00> : vector<8x32xf32>
    %14 = tpu.matmul %12, %13, %cst_9 {dimension_numbers = #tpu.dot_dimension_numbers<[1], [0], [0], [1], [0, 0, 1, 1], [], []>} : vector<8x32xbf16>, vector<32x32xbf16>, vector<8x32xf32> -> vector<8x32xf32>
    %c0_10 = arith.constant 0 : index
    %c0_11 = arith.constant 0 : index
    %15 = vector.load %arg5[%c0_10, %c0_11] : memref<1x32xf32, #tpu.memory_space<vmem>>, vector<1x32xf32>
    %16 = vector.broadcast %15 : vector<1x32xf32> to vector<8x32xf32>
    %17 = arith.addf %14, %16 : vector<8x32xf32>
    %cst_12 = arith.constant 0.000000e+00 : f32
    %18 = vector.broadcast %cst_12 : f32 to vector<8x32xf32>
    %19 = arith.cmpf oge, %17, %18 : vector<8x32xf32>
    %cst_13 = arith.constant 0.00999999977 : f32
    %20 = vector.broadcast %cst_13 : f32 to vector<8x32xf32>
    %21 = arith.mulf %20, %17 : vector<8x32xf32>
    %22 = arith.select %19, %17, %21 : vector<8x32xi1>, vector<8x32xf32>
    %23 = arith.truncf %22 : vector<8x32xf32> to vector<8x32xbf16>
    %c0_14 = arith.constant 0 : index
    %c0_15 = arith.constant 0 : index
    %24 = vector.load %arg6[%c0_14, %c0_15] : memref<32x16xbf16, #tpu.memory_space<vmem>>, vector<32x16xbf16>
    %cst_16 = arith.constant dense<0.000000e+00> : vector<8x16xf32>
    %25 = tpu.matmul %23, %24, %cst_16 {dimension_numbers = #tpu.dot_dimension_numbers<[1], [0], [0], [1], [0, 0, 1, 1], [], []>} : vector<8x32xbf16>, vector<32x16xbf16>, vector<8x16xf32> -> vector<8x16xf32>
    %c0_17 = arith.constant 0 : index
    %c0_18 = arith.constant 0 : index
    %26 = vector.load %arg7[%c0_17, %c0_18] : memref<1x16xf32, #tpu.memory_space<vmem>>, vector<1x16xf32>
    %27 = vector.broadcast %26 : vector<1x16xf32> to vector<8x16xf32>
    %28 = arith.addf %25, %27 : vector<8x16xf32>
    %cst_19 = arith.constant 0.000000e+00 : f32
    %29 = vector.broadcast %cst_19 : f32 to vector<8x16xf32>
    %30 = arith.cmpf oge, %28, %29 : vector<8x16xf32>
    %cst_20 = arith.constant 0.00999999977 : f32
    %31 = vector.broadcast %cst_20 : f32 to vector<8x16xf32>
    %32 = arith.mulf %31, %28 : vector<8x16xf32>
    %33 = arith.select %30, %28, %32 : vector<8x16xi1>, vector<8x16xf32>
    %34 = arith.truncf %33 : vector<8x16xf32> to vector<8x16xbf16>
    %c0_21 = arith.constant 0 : index
    %c0_22 = arith.constant 0 : index
    %35 = vector.load %arg8[%c0_21, %c0_22] : memref<16x2xbf16, #tpu.memory_space<vmem>>, vector<16x2xbf16>
    %cst_23 = arith.constant dense<0.000000e+00> : vector<8x2xf32>
    %36 = tpu.matmul %34, %35, %cst_23 {dimension_numbers = #tpu.dot_dimension_numbers<[1], [0], [0], [1], [0, 0, 1, 1], [], []>} : vector<8x16xbf16>, vector<16x2xbf16>, vector<8x2xf32> -> vector<8x2xf32>
    %c0_24 = arith.constant 0 : index
    %c0_25 = arith.constant 0 : index
    %37 = vector.load %arg9[%c0_24, %c0_25] : memref<1x2xf32, #tpu.memory_space<vmem>>, vector<1x2xf32>
    %38 = vector.broadcast %37 : vector<1x2xf32> to vector<8x2xf32>
    %39 = arith.addf %36, %38 : vector<8x2xf32>
    %40 = arith.negf %39 : vector<8x2xf32>
    %41 = math.exp %40 : vector<8x2xf32>
    %cst_26 = arith.constant 1.000000e+00 : f32
    %42 = vector.broadcast %cst_26 : f32 to vector<8x2xf32>
    %43 = arith.addf %42, %41 : vector<8x2xf32>
    %44 = arith.divf %42, %43 : vector<8x2xf32>
    %45 = vector.extract_strided_slice %44 {offsets = [0, 0], sizes = [8, 1], strides = [1, 1]} : vector<8x2xf32> to vector<8x1xf32>
    %cst_27 = arith.constant 5.000000e-01 : f32
    %46 = vector.broadcast %cst_27 : f32 to vector<8x1xf32>
    %47 = arith.mulf %46, %45 : vector<8x1xf32>
    %48 = vector.extract_strided_slice %44 {offsets = [0, 1], sizes = [8, 1], strides = [1, 1]} : vector<8x2xf32> to vector<8x1xf32>
    %cst_28 = arith.constant 5.000000e-01 : f32
    %49 = vector.broadcast %cst_28 : f32 to vector<8x1xf32>
    %50 = arith.mulf %49, %48 : vector<8x1xf32>
    %51 = arith.addf %47, %50 : vector<8x1xf32>
    %c0_29 = arith.constant 0 : index
    %c0_30 = arith.constant 0 : index
    %52 = vector.load %arg10[%c0_29, %c0_30] : memref<8x1xf32, #tpu.memory_space<vmem>>, vector<8x1xf32>
    tpu.vector_store %arg10[%c0_29, %c0_30], %51 {strides = array<i32>} : memref<8x1xf32, #tpu.memory_space<vmem>>, vector<8x1xf32>,
    return
  }
  func.func @transform_0(%arg0: i32) -> (i32, i32) {
    %c0_i32 = arith.constant 0 : i32
    %c0_i32_0 = arith.constant 0 : i32
    return %arg0, %c0_i32 : i32, i32
  }
  func.func @transform_1(%arg0: i32) -> (i32, i32) {
    %c0_i32 = arith.constant 0 : i32
    %c0_i32_0 = arith.constant 0 : i32
    %c0_i32_1 = arith.constant 0 : i32
    return %c0_i32, %c0_i32_0 : i32, i32
  }
  func.func @transform_2(%arg0: i32) -> (i32, i32) {
    %c0_i32 = arith.constant 0 : i32
    %c0_i32_0 = arith.constant 0 : i32
    %c0_i32_1 = arith.constant 0 : i32
    return %c0_i32, %c0_i32_0 : i32, i32
  }
  func.func @transform_3(%arg0: i32) -> (i32, i32) {
    %c0_i32 = arith.constant 0 : i32
    %c0_i32_0 = arith.constant 0 : i32
    %c0_i32_1 = arith.constant 0 : i32
    return %c0_i32, %c0_i32_0 : i32, i32
  }
  func.func @transform_4(%arg0: i32) -> (i32, i32) {
    %c0_i32 = arith.constant 0 : i32
    %c0_i32_0 = arith.constant 0 : i32
    %c0_i32_1 = arith.constant 0 : i32
    return %c0_i32, %c0_i32_0 : i32, i32
  }
  func.func @transform_5(%arg0: i32) -> (i32, i32) {
    %c0_i32 = arith.constant 0 : i32
    %c0_i32_0 = arith.constant 0 : i32
    %c0_i32_1 = arith.constant 0 : i32
    return %c0_i32, %c0_i32_0 : i32, i32
  }
  func.func @transform_6(%arg0: i32) -> (i32, i32) {
    %c0_i32 = arith.constant 0 : i32
    %c0_i32_0 = arith.constant 0 : i32
    %c0_i32_1 = arith.constant 0 : i32
    return %c0_i32, %c0_i32_0 : i32, i32
  }
  func.func @transform_7(%arg0: i32) -> (i32, i32) {
    %c0_i32 = arith.constant 0 : i32
    %c0_i32_0 = arith.constant 0 : i32
    %c0_i32_1 = arith.constant 0 : i32
    return %c0_i32, %c0_i32_0 : i32, i32
  }
  func.func @transform_8(%arg0: i32) -> (i32, i32) {
    %c0_i32 = arith.constant 0 : i32
    %c0_i32_0 = arith.constant 0 : i32
    %c0_i32_1 = arith.constant 0 : i32
    return %c0_i32, %c0_i32_0 : i32, i32
  }
  func.func @transform_9(%arg0: i32) -> (i32, i32) {
    %c0_i32 = arith.constant 0 : i32
    %c0_i32_0 = arith.constant 0 : i32
    return %arg0, %c0_i32 : i32, i32
  }
}

</mosaic_0001>

<bundles_post_ra>
// kernel: tpu_custom_call.1
= control target key start
LH: loop header
LB: loop body
LE: loop exit
PB: predicated region body
PF: predicated region fallthrough
CT: control target
= control target key end

     0   :  { %s884_s30 = smov 0   ;;  %s982_s0 = inlined_call_operand.vmem [shape: f32[16,256], index: 0, kind: input, shape index: {}]   ;;  %s983_s1 = inlined_call_operand.vmem [shape: bf16[256,32], index: 1, kind: input, shape index: {}]   ;;  %s984_s2 = inlined_call_operand.vmem [shape: f32[1,32], index: 2, kind: input, shape index: {}]   ;;  %s985_s3 = inlined_call_operand.vmem [shape: bf16[32,32], index: 3, kind: input, shape index: {}]   ;;  %s986_s4 = inlined_call_operand.vmem [shape: f32[1,32], index: 4, kind: input, shape index: {}]   ;;  %s987_s5 = inlined_call_operand.vmem [shape: bf16[32,16], index: 5, kind: input, shape index: {}]   ;;  %s988_s6 = inlined_call_operand.vmem [shape: f32[1,16], index: 6, kind: input, shape index: {}]   ;;  %s989_s7 = inlined_call_operand.vmem [shape: bf16[16,2], index: 7, kind: input, shape index: {}]   ;;  %s990_s8 = inlined_call_operand.vmem [shape: f32[1,2], index: 8, kind: input, shape index: {}]   ;;  %s991_s9 = inlined_call_operand.vmem [shape: f32[16,1], index: 9, kind: output, shape index: {}]  }
   0x1 LB: > { %s688_s10 = sadd.s32 4294967295, %s831_s30   ;;  %p692_p0 = scmp.ge.s32.totalorder %s831_s30, 1  ;;  %s831_s30 = sphi %s884_s30, %s19_s30  }
   0x2   : > { %p287_p1 = scmp.lt.s32.totalorder %s831_s30, 3 }
   0x4   : > { %p288_p2 = pnand %p692_p0, %p287_p1 }
   0x5   : > { %p322_p3 = scmp.lt.s32.totalorder (!%p288_p2), %s688_s10, 1  ;;  %s833_s27 = smov (!%p288_p2), 127  }
   0x6   : > { %291 = sbr.rel (%p288_p2) target bundleno = 738 (0x2e2), region = 56 }
   0xb   : > { %v794_v0 = vld [vmem:[%s983_s1 + $0x38] sm:$0xff]  ;;  %v793_v2 = vld [vmem:[%s983_s1 + $0x30] sm:$0xff]  ;;  %v792_v4 = vld [vmem:[%s983_s1 + $0x28] sm:$0xff]  ;;  %s993_s10 = smov (!%p322_p3, %s688_s10), 1  ;;  %vm518_vm1 = vcmask 261120   ;;  %vm591_vm4 = vcmask 130048  }
   0xc   : > { %v802_v1 = vld [vmem:[%s983_s1 + $0x78] sm:$0xff]  ;;  %468 = vmatpush.bf16.msra.mxu0 %v794_v0  ;;  %v801_v3 = vld [vmem:[%s983_s1 + $0x70] sm:$0xff]  ;;  %v800_v5 = vld [vmem:[%s983_s1 + $0x68] sm:$0xff]  ;;  %s786_s16 = sshll.u32 %s993_s10, 4  ;;  %s695_s28 = sshll.u32 %s993_s10, 3  ;;  %vm633_vm9 = vcmask 7168  }
   0xd   : > { %481 = vmatpush.bf16.msra.mxu1 %v802_v1  ;;  %v791_v6 = vld [vmem:[%s983_s1 + $0x20] sm:$0xff]  ;;  %v790_v8 = vld [vmem:[%s983_s1 + $0x18] sm:$0xff]  ;;  %v789_v10 = vld [vmem:[%s983_s1 + $0x10] sm:$0xff]  ;;  %s326_s23 = scalar_lea.vmem %s982_s0, %s786_s16  ;;  %s330_s12 = scalar_lea.vmem %s991_s9, %s695_s28 }
   0xe   : > { %v799_v7 = vld [vmem:[%s983_s1 + $0x60] sm:$0xff]  ;;  %v798_v9 = vld [vmem:[%s983_s1 + $0x58] sm:$0xff]  ;;  %v797_v11 = vld [vmem:[%s983_s1 + $0x50] sm:$0xff] }
   0xf   : > { %v788_v12 = vld [vmem:[%s983_s1 + $0x8] sm:$0xff]  ;;  %v787_v14 = vld [vmem:[%s983_s1] sm:$0xff] }
  0x10   : > { %469 = vmatpush.bf16.msra.mxu0 %v793_v2  ;;  %v796_v13 = vld [vmem:[%s983_s1 + $0x48] sm:$0xff]  ;;  %v795_v15 = vld [vmem:[%s983_s1 + $0x40] sm:$0xff] }
  0x11   : > { %482 = vmatpush.bf16.msra.mxu1 %v801_v3  ;;  %v332_v16 = vld [vmem:[%s326_s23] sm:$0xff]  ;;  %v333_v17 = vld [vmem:[%s326_s23 + $0x8] sm:$0xff] }
  0x12   : > { %v334_v18 = vpack.c.bf16 %v332_v16, %v332_v16  ;;  %v335_v19 = vpack.c.bf16 %v333_v17, %v333_v17  ;;  %v804_v20 = vld [vmem:[%s985_s3 + $0x8] sm:$0xff]  ;;  %v803_v21 = vld [vmem:[%s985_s3] sm:$0xff] }
  0x13   : > { %528 = vmatpush.bf16.msra.mxu2 %v804_v20  ;;  %v817_v22 = vld [vmem:[%s984_s2] ss:$0 sm:$0xff]  ;;  %v806_v32 = vld [vmem:[%s987_s5 + $0x8] sm:$0xff] }
  0x14   : > { %470 = vmatpush.bf16.msra.mxu0 %v792_v4  ;;  %568 = vmatpush.bf16.msra.mxu3 %v806_v32  ;;  %v805_v33 = vld [vmem:[%s987_s5] sm:$0xff] }
  0x15   : > { %483 = vmatpush.bf16.msra.mxu1 %v800_v5  ;;  %v807_v34 = vld [vmem:[%s989_s7] sm:$0xff] }
  0x16   : > { %v818_v35 = vld [vmem:[%s986_s4] ss:$0 sm:$0xff] }
  0x17   : > { %529 = vmatpush.bf16.msra.mxu2 %v803_v21  ;;  %v819_v42 = vld [vmem:[%s988_s6] ss:$0 sm:$0xff] }
  0x18   : > { %471 = vmatpush.bf16.msra.mxu0 %v791_v6  ;;  %569 = vmatpush.bf16.msra.mxu3 %v805_v33  ;;  %v820_v49 = vld [vmem:[%s990_s8] ss:$0 sm:$0xff] }
  0x19   : > { %484 = vmatpush.bf16.msra.mxu1 %v799_v7 }
  0x1b   : > { %602 = vmatpush.bf16.msrb.mxu2 %v807_v34 }
  0x1c   : > { %472 = vmatpush.bf16.msra.mxu0 %v790_v8 }
  0x1d   : > { %485 = vmatpush.bf16.msra.mxu1 %v798_v9 }
  0x20   : > { %473 = vmatpush.bf16.msra.mxu0 %v789_v10 }
  0x21   : > { %486 = vmatpush.bf16.msra.mxu1 %v797_v11 }
  0x24   : > { %474 = vmatpush.bf16.msra.mxu0 %v788_v12 }
  0x25   : > { %487 = vmatpush.bf16.msra.mxu1 %v796_v13 }
  0x28   : > { %475 = vmatpush.bf16.msra.mxu0 %v787_v14 }
  0x29   : > { %488 = vmatpush.bf16.msra.mxu1 %v795_v15 }
  0x2b   : > { %476 = vmatmul.bf16.vlgmr.msra.gmra.mxu0 %v334_v18 }
  0x2c   : > { %489 = vmatmul.bf16.vlgmr.msra.gmra.mxu1 %v335_v19 }
  0xa8   : > { %v477_v23 = vpop.f32.mrf.mxu0 }
  0xa9   : > { %v490_v24 = vpop.f32.mrf.mxu1  ;;  %v478_v25 = vadd.f32 %v817_v22, %v477_v23 }
  0xab   : > { %v491_v26 = vadd.f32 %v490_v24, %v478_v25 }
  0xad   : > { %vm494_vm0 = vcmp.ge.f32.partialorder %v491_v26, 0.0  ;;  %v495_v27 = vmul.f32 0.01, %v491_v26 }
  0xaf   : > { %v496_v28 = vsel %vm494_vm0, %v491_v26, %v495_v27 }
  0xb0   : > { %v479_v29 = vpop.f32.mrf.mxu0  ;;  %v497_v31 = vpack.c.bf16 %v496_v28, %v496_v28 }
  0xb1   : > { %v492_v30 = vpop.f32.mrf.mxu1 }
  0xb2   : > { %768 = vmatmul.msk.bf16.vlgmr.msra.gmra.mxu2 %vm518_vm1, %v497_v31 }
 0x135   : > { %v531_v36 = vpop.f32.mrf.mxu2 }
 0x136   : > { %v532_v37 = vadd.f32 %v818_v35, %v531_v36 }
 0x138   : > { %vm535_vm2 = vcmp.ge.f32.partialorder %v532_v37, 0.0  ;;  %v536_v38 = vmul.f32 0.01, %v532_v37 }
 0x13a   : > { %v537_v39 = vsel %vm535_vm2, %v532_v37, %v536_v38 }
 0x13b   : > { %v538_v40 = vpack.c.bf16 %v537_v39, %v537_v39 }
 0x13d   : > { %v533_v41 = vpop.f32.mrf.mxu2  ;;  %777 = vmatmul.msk.bf16.vlgmr.msra.gmra.mxu3 %vm518_vm1, %v538_v40 }
 0x1c0   : > { %v571_v43 = vpop.f32.mrf.mxu3 }
 0x1c1   : > { %v572_v44 = vadd.f32 %v819_v42, %v571_v43 }
 0x1c3   : > { %vm575_vm3 = vcmp.ge.f32.partialorder %v572_v44, 0.0  ;;  %v576_v45 = vmul.f32 0.01, %v572_v44 }
 0x1c5   : > { %v577_v46 = vsel %vm575_vm3, %v572_v44, %v576_v45 }
 0x1c6   : > { %v578_v47 = vpack.c.bf16 %v577_v46, %v577_v46 }
 0x1c8   : > { %v573_v48 = vpop.f32.mrf.mxu3  ;;  %782 = vmatmul.msk.bf16.vlgmr.msrb.gmra.mxu2 %vm591_vm4, %v578_v47 }
 0x24b   : > { %v604_v50 = vpop.f32.mrf.mxu2 }
 0x24c   : > { %v605_v51 = vadd.f32 %v820_v49, %v604_v50 }
 0x24e   : > { %v783_v52 = vmul.f32 -1.442695, %v605_v51 }
 0x250   : > { %821 = vpow2.f32 %v783_v52 }
 0x253   : > { %v606_v53 = vpop.f32.mrf.mxu2 }
 0x256   : > { %v822_v54 = vpop.eup %821 }
 0x257   : > { %v611_v55 = vadd.f32 1.0, %v822_v54 }
 0x259   : > { %823 = vrcp.f32 %v611_v55  ;;  %v623_v59 = vand.u32 2147483648, %v611_v55  ;;  %v621_v61 = vand.u32 2147483647, %v611_v55  ;;  %vm617_vm6 = vweird.f32 %v611_v55 }
 0x25b   : > { %v624_v63 = vor.u32 1.1754944e-38, %v623_v59  ;;  %vm622_vm8 = vcmp.eq.f32.partialorder %v621_v61, 8.507059e+37 }
 0x25f   : > { %v824_v56 = vpop.eup %823 }
 0x260   : > { %v613_v57 = vmul.f32 %v824_v56, %v611_v55  ;;  %vm618_vm5 = vweird.f32 %v824_v56 }
 0x261   : > { %vm619_vm7 = vmor %vm617_vm6, %vm618_vm5 }
 0x262   : > { %v614_v58 = vsub.f32 1.0, %v613_v57 }
 0x264   : > { %v615_v60 = vmul.f32 %v824_v56, %v614_v58 }
 0x266   : > { %v616_v62 = vadd.f32 %v824_v56, %v615_v60 }
 0x268   : > { %v620_v0 = vsel %vm619_vm7, %v824_v56, %v616_v62 }
 0x269   : > { %v625_v1 = vsel %vm622_vm8, %v624_v63, %v620_v0 }
 0x26a   : > { %v627_v2 = vmul.f32 0.5, %v625_v1 }
 0x26c   : > { %629 = vrot.lane.b32.xlu0 %v627_v2, %s833_s27 }
 0x2de   : > { %v630_v3 = vpop.permute.xlu0 %629 }
 0x2df   : > { %v632_v4 = vadd.f32 %v630_v3, %v627_v2 }
 0x2e1   : > { %634 = vst.msk [vmem:[%s330_s12] sm:$0xff] %vm633_vm9, %v632_v4 }
 0x2e2 PF: > { %s19_s30 = sadd.s32 1, %s831_s30  }
 0x2e3   : > { %p16_p4 = scmp.ge.s32.totalorder %s19_s30, 4  }
 0x2e5   :  { %18 = sbr.rel (!%p16_p4) target bundleno = 1 (0x1), region = 86 }

</bundles_post_ra>
